<compile_context>
chip_gen: v5e
topology: v5e:2x2
jax: 0.10.0
libtpu: 0.0.40
codegen_flags: <defaults>
</compile_context>

<pallas_src>
import functools

import jax
import jax.numpy as jnp
from jax.experimental import pallas as pl
from jax.experimental.pallas import tpu as pltpu

LANE = 128          # vreg lane width
MAX_TILE_B = 512    # batch-tile rows (largest that comfortably fits VMEM here)


def _round_up(n: int, m: int) -> int:
    return (n + m - 1) // m * m


def _relu_dropout(h, seed_u32, layer_salt, row_offset):
    """Fused relu + dropout(p=0.5) with a counter-based hash (no HW PRNG).

    kept elements are scaled by 1/(1-p) = 2.0, like F.dropout(training=True).
    """
    rows = jax.lax.broadcasted_iota(jnp.uint32, h.shape, 0) + row_offset
    cols = jax.lax.broadcasted_iota(jnp.uint32, h.shape, 1)
    z = rows * jnp.uint32(0x9E3779B9) + cols * jnp.uint32(0x85EBCA6B)
    z = z ^ seed_u32 ^ jnp.uint32(layer_salt)
    # murmur3-style finalizer (good avalanche on the top bit)
    z = z ^ (z >> jnp.uint32(16))
    z = z * jnp.uint32(0x7FEB352D)
    z = z ^ (z >> jnp.uint32(15))
    z = z * jnp.uint32(0x846CA68B)
    z = z ^ (z >> jnp.uint32(16))
    keep = (z >> jnp.uint32(31)) == jnp.uint32(1)     # fair coin from top bit
    return jnp.where(keep & (h > 0.0), h * 2.0, 0.0)


def mlp_kernel(seed_ref,                  # SMEM (scalar prefetch): (1,) int32
               x_ref,                     # (TB, Hp) bf16
               w0_ref, b0_ref,            # (Hp, Hp) bf16, (1, Hp) f32
               w1_ref, b1_ref,            # (Hp, Hp) bf16, (1, Hp) f32
               w2_ref, b2_ref,            # (Hp, Np) bf16, (1, Np) f32
               o_ref):                    # (TB, Np) f32
    seed_u32 = seed_ref[0].astype(jnp.uint32)
    # global row offset of this batch tile -> per-tile independent dropout mask
    row_off = (pl.program_id(0) * x_ref.shape[0]).astype(jnp.uint32)

    xb = x_ref[...]                                            # bf16

    # fc -> relu -> dropout   (bf16 MXU operands, f32 accumulate + elementwise)
    h = jnp.dot(xb, w0_ref[...], preferred_element_type=jnp.float32)
    h = h + b0_ref[...]
    h = _relu_dropout(h, seed_u32, 0x243F6A88, row_off)

    # fc1 -> relu -> dropout
    h = jnp.dot(h.astype(jnp.bfloat16), w1_ref[...],
                preferred_element_type=jnp.float32)
    h = h + b1_ref[...]
    h = _relu_dropout(h, seed_u32, 0xB7E15162, row_off)

    # fc2 -> sigmoid  (lane-dense Np-wide output; padding sliced off outside)
    logits = jnp.dot(h.astype(jnp.bfloat16), w2_ref[...],
                     preferred_element_type=jnp.float32)
    logits = logits + b2_ref[...]
    o_ref[...] = jax.nn.sigmoid(logits)


@jax.jit
def mlp_classifier_forward(x, params, seed):
    """x: (B, H) float32.  params: dict of (in, out) weights and (1, out) biases.

    Returns sigmoid(fc2(dropout(relu(fc1(dropout(relu(fc(x)))))))) of shape (B, O).
    """
    B, H = x.shape
    O = params["w2"].shape[1]

    # Lane-dense padded sizes (zero-padding a Linear is mathematically a no-op).
    Hp = _round_up(H, LANE)
    Np = _round_up(O, LANE)
    TB = min(MAX_TILE_B, _round_up(B, 8))
    Bp = _round_up(B, TB)

    # Pad + cast matmul operands to bf16 (f32 accumulation inside the kernel).
    x_p = jnp.pad(x, ((0, Bp - B), (0, Hp - H))).astype(jnp.bfloat16)
    w0 = jnp.pad(params["w0"], ((0, Hp - H), (0, Hp - H))).astype(jnp.bfloat16)
    w1 = jnp.pad(params["w1"], ((0, Hp - H), (0, Hp - H))).astype(jnp.bfloat16)
    w2 = jnp.pad(params["w2"], ((0, Hp - H), (0, Np - O))).astype(jnp.bfloat16)
    b0 = jnp.pad(params["b0"], ((0, 0), (0, Hp - H))).astype(jnp.float32)
    b1 = jnp.pad(params["b1"], ((0, 0), (0, Hp - H))).astype(jnp.float32)
    b2 = jnp.pad(params["b2"], ((0, 0), (0, Np - O))).astype(jnp.float32)
    seed = seed.astype(jnp.int32).reshape((1,))

    grid = (Bp // TB,)

    # Weights/biases: same block every step -> VMEM resident across the grid.
    resident = lambda i, s: (0, 0)

    out_padded = pl.pallas_call(
        mlp_kernel,
        out_shape=jax.ShapeDtypeStruct((Bp, Np), jnp.float32),
        grid_spec=pltpu.PrefetchScalarGridSpec(
            num_scalar_prefetch=1,            # seed -> SMEM, before the grid
            grid=grid,
            in_specs=[
                pl.BlockSpec((TB, Hp), lambda i, s: (i, 0)),   # x tile
                pl.BlockSpec((Hp, Hp), resident),              # w0
                pl.BlockSpec((1, Hp), resident),               # b0
                pl.BlockSpec((Hp, Hp), resident),              # w1
                pl.BlockSpec((1, Hp), resident),               # b1
                pl.BlockSpec((Hp, Np), resident),              # w2
                pl.BlockSpec((1, Np), resident),               # b2
            ],
            out_specs=pl.BlockSpec((TB, Np), lambda i, s: (i, 0)),
        ),
        compiler_params=pltpu.CompilerParams(
            # batch axis is embarrassingly parallel -> megacore on v7x
            dimension_semantics=("parallel",),
            # explicit budget (safe on v7x's 64 MiB VMEM; tiny usage here)
            vmem_limit_bytes=48 * 1024 * 1024,
        ),
    )(seed, x_p, w0, b0, w1, b1, w2, b2)

    return out_padded[:B, :O]


def init_params(key, hidden_channels, out_channels):
    """Mimics nn.Linear default init U(-1/sqrt(fan_in), 1/sqrt(fan_in)).

    Weights stored transposed as (in_features, out_features); biases as
    (1, out_features) so the kernel computes y = x @ W + b directly.
    """
    def linear(k, fan_in, fan_out):
        kw, kb = jax.random.split(k)
        bound = 1.0 / jnp.sqrt(float(fan_in))
        w = jax.random.uniform(kw, (fan_in, fan_out), jnp.float32, -bound, bound)
        b = jax.random.uniform(kb, (1, fan_out), jnp.float32, -bound, bound)
        return w, b

    k0, k1, k2 = jax.random.split(key, 3)
    w0, b0 = linear(k0, hidden_channels, hidden_channels)
    w1, b1 = linear(k1, hidden_channels, hidden_channels)
    w2, b2 = linear(k2, hidden_channels, out_channels)
    return {"w0": w0, "b0": b0, "w1": w1, "b1": b1, "w2": w2, "b2": b2}


if __name__ == "__main__":
    # TODO(synk): no eval-mode flag is plumbed; like the PyTorch module's
    # F.dropout default, dropout is ALWAYS applied (training=True semantics).
    key = jax.random.PRNGKey(0)
    k_x, k_p = jax.random.split(key)

    batch = 8
    hidden_channels = 32
    out_channels = 4

    x = jax.random.normal(k_x, (batch, hidden_channels), dtype=jnp.float32)
    params = init_params(k_p, hidden_channels, out_channels)
    seed = jnp.array([1234], dtype=jnp.int32)   # deterministic dropout seed

    out = mlp_classifier_forward(x, params, seed)
    out = jax.block_until_ready(out)

    assert out.shape == (batch, out_channels), out.shape
    assert bool(jnp.all(jnp.isfinite(out)))
    assert bool(jnp.all(out >= 0.0)) and bool(jnp.all(out <= 1.0))
    print("KERNEL_OK")
</pallas_src>

<mosaic_0001>
module attributes {stable_mosaic.version = 11 : i64} {
  func.func @mlp_kernel(%arg0: i32, %arg1: memref<1xi32, #tpu.memory_space<smem>>, %arg2: memref<8x128xbf16, #tpu.memory_space<vmem>>, %arg3: memref<128x128xbf16, #tpu.memory_space<vmem>>, %arg4: memref<1x128xf32, #tpu.memory_space<vmem>>, %arg5: memref<128x128xbf16, #tpu.memory_space<vmem>>, %arg6: memref<1x128xf32, #tpu.memory_space<vmem>>, %arg7: memref<128x128xbf16, #tpu.memory_space<vmem>>, %arg8: memref<1x128xf32, #tpu.memory_space<vmem>>, %arg9: memref<8x128xf32, #tpu.memory_space<vmem>>) attributes {dimension_semantics = [#tpu.dimension_semantics<parallel>], iteration_bounds = array<i64: 1>, scalar_prefetch = 1 : i64, scratch_operands = 0 : i64, tpu.core_type = #tpu.core_type<tc>, window_params = [{transform_indices = @transform_0, window_bounds = array<i64: 8, 128>}, {pipeline_mode = #tpu.pipeline_mode<synchronous>, transform_indices = @transform_1, window_bounds = array<i64: 128, 128>}, {pipeline_mode = #tpu.pipeline_mode<synchronous>, transform_indices = @transform_2, window_bounds = array<i64: 1, 128>}, {pipeline_mode = #tpu.pipeline_mode<synchronous>, transform_indices = @transform_3, window_bounds = array<i64: 128, 128>}, {pipeline_mode = #tpu.pipeline_mode<synchronous>, transform_indices = @transform_4, window_bounds = array<i64: 1, 128>}, {pipeline_mode = #tpu.pipeline_mode<synchronous>, transform_indices = @transform_5, window_bounds = array<i64: 128, 128>}, {pipeline_mode = #tpu.pipeline_mode<synchronous>, transform_indices = @transform_6, window_bounds = array<i64: 1, 128>}, {transform_indices = @transform_7, window_bounds = array<i64: 8, 128>}]} {
    %c0 = arith.constant 0 : index
    %0 = memref.load %arg1[%c0] : memref<1xi32, #tpu.memory_space<smem>>
    %c8_i32 = arith.constant 8 : i32
    %1 = arith.muli %arg0, %c8_i32 : i32
    %c0_0 = arith.constant 0 : index
    %c0_1 = arith.constant 0 : index
    %2 = vector.load %arg2[%c0_0, %c0_1] : memref<8x128xbf16, #tpu.memory_space<vmem>>, vector<8x128xbf16>
    %c0_2 = arith.constant 0 : index
    %c0_3 = arith.constant 0 : index
    %3 = vector.load %arg3[%c0_2, %c0_3] : memref<128x128xbf16, #tpu.memory_space<vmem>>, vector<128x128xbf16>
    %cst = arith.constant dense<0.000000e+00> : vector<8x128xf32>
    %4 = tpu.matmul %2, %3, %cst {dimension_numbers = #tpu.dot_dimension_numbers<[1], [0], [0], [1], [0, 0, 1, 1], [], []>} : vector<8x128xbf16>, vector<128x128xbf16>, vector<8x128xf32> -> vector<8x128xf32>
    %c0_4 = arith.constant 0 : index
    %c0_5 = arith.constant 0 : index
    %5 = vector.load %arg4[%c0_4, %c0_5] : memref<1x128xf32, #tpu.memory_space<vmem>>, vector<1x128xf32>
    %6 = vector.broadcast %5 : vector<1x128xf32> to vector<8x128xf32>
    %7 = arith.addf %4, %6 : vector<8x128xf32>
    %8 = tpu.iota {dimensions = array<i32: 0>} : vector<8x128xi32>
    %9 = vector.broadcast %1 : i32 to vector<8x128xi32>
    %10 = arith.addi %8, %9 : vector<8x128xi32>
    %11 = tpu.iota {dimensions = array<i32: 1>} : vector<8x128xi32>
    %c-1640531527_i32 = arith.constant -1640531527 : i32
    %12 = vector.broadcast %c-1640531527_i32 : i32 to vector<8x128xi32>
    %13 = arith.muli %10, %12 : vector<8x128xi32>
    %c-2048144789_i32 = arith.constant -2048144789 : i32
    %14 = vector.broadcast %c-2048144789_i32 : i32 to vector<8x128xi32>
    %15 = arith.muli %11, %14 : vector<8x128xi32>
    %16 = arith.addi %13, %15 : vector<8x128xi32>
    %17 = vector.broadcast %0 : i32 to vector<8x128xi32>
    %18 = arith.xori %16, %17 : vector<8x128xi32>
    %c608135816_i32 = arith.constant 608135816 : i32
    %19 = vector.broadcast %c608135816_i32 : i32 to vector<8x128xi32>
    %20 = arith.xori %18, %19 : vector<8x128xi32>
    %c16_i32 = arith.constant 16 : i32
    %21 = vector.broadcast %c16_i32 : i32 to vector<8x128xi32>
    %22 = arith.shrui %20, %21 : vector<8x128xi32>
    %23 = arith.xori %20, %22 : vector<8x128xi32>
    %c2146121005_i32 = arith.constant 2146121005 : i32
    %24 = vector.broadcast %c2146121005_i32 : i32 to vector<8x128xi32>
    %25 = arith.muli %23, %24 : vector<8x128xi32>
    %c15_i32 = arith.constant 15 : i32
    %26 = vector.broadcast %c15_i32 : i32 to vector<8x128xi32>
    %27 = arith.shrui %25, %26 : vector<8x128xi32>
    %28 = arith.xori %25, %27 : vector<8x128xi32>
    %c-2073254261_i32 = arith.constant -2073254261 : i32
    %29 = vector.broadcast %c-2073254261_i32 : i32 to vector<8x128xi32>
    %30 = arith.muli %28, %29 : vector<8x128xi32>
    %c16_i32_6 = arith.constant 16 : i32
    %31 = vector.broadcast %c16_i32_6 : i32 to vector<8x128xi32>
    %32 = arith.shrui %30, %31 : vector<8x128xi32>
    %33 = arith.xori %30, %32 : vector<8x128xi32>
    %c31_i32 = arith.constant 31 : i32
    %34 = vector.broadcast %c31_i32 : i32 to vector<8x128xi32>
    %35 = arith.shrui %33, %34 : vector<8x128xi32>
    %c1_i32 = arith.constant 1 : i32
    %36 = vector.broadcast %c1_i32 : i32 to vector<8x128xi32>
    %37 = arith.cmpi eq, %35, %36 : vector<8x128xi32>
    %cst_7 = arith.constant 0.000000e+00 : f32
    %38 = vector.broadcast %cst_7 : f32 to vector<8x128xf32>
    %39 = arith.cmpf ogt, %7, %38 : vector<8x128xf32>
    %40 = arith.andi %37, %39 : vector<8x128xi1>
    %cst_8 = arith.constant 2.000000e+00 : f32
    %41 = vector.broadcast %cst_8 : f32 to vector<8x128xf32>
    %42 = arith.mulf %7, %41 : vector<8x128xf32>
    %cst_9 = arith.constant 0.000000e+00 : f32
    %43 = vector.broadcast %cst_9 : f32 to vector<8x128xf32>
    %44 = arith.select %40, %42, %43 : vector<8x128xi1>, vector<8x128xf32>
    %45 = arith.truncf %44 : vector<8x128xf32> to vector<8x128xbf16>
    %c0_10 = arith.constant 0 : index
    %c0_11 = arith.constant 0 : index
    %46 = vector.load %arg5[%c0_10, %c0_11] : memref<128x128xbf16, #tpu.memory_space<vmem>>, vector<128x128xbf16>
    %cst_12 = arith.constant dense<0.000000e+00> : vector<8x128xf32>
    %47 = tpu.matmul %45, %46, %cst_12 {dimension_numbers = #tpu.dot_dimension_numbers<[1], [0], [0], [1], [0, 0, 1, 1], [], []>} : vector<8x128xbf16>, vector<128x128xbf16>, vector<8x128xf32> -> vector<8x128xf32>
    %c0_13 = arith.constant 0 : index
    %c0_14 = arith.constant 0 : index
    %48 = vector.load %arg6[%c0_13, %c0_14] : memref<1x128xf32, #tpu.memory_space<vmem>>, vector<1x128xf32>
    %49 = vector.broadcast %48 : vector<1x128xf32> to vector<8x128xf32>
    %50 = arith.addf %47, %49 : vector<8x128xf32>
    %51 = tpu.iota {dimensions = array<i32: 0>} : vector<8x128xi32>
    %52 = vector.broadcast %1 : i32 to vector<8x128xi32>
    %53 = arith.addi %51, %52 : vector<8x128xi32>
    %54 = tpu.iota {dimensions = array<i32: 1>} : vector<8x128xi32>
    %c-1640531527_i32_15 = arith.constant -1640531527 : i32
    %55 = vector.broadcast %c-1640531527_i32_15 : i32 to vector<8x128xi32>
    %56 = arith.muli %53, %55 : vector<8x128xi32>
    %c-2048144789_i32_16 = arith.constant -2048144789 : i32
    %57 = vector.broadcast %c-2048144789_i32_16 : i32 to vector<8x128xi32>
    %58 = arith.muli %54, %57 : vector<8x128xi32>
    %59 = arith.addi %56, %58 : vector<8x128xi32>
    %60 = vector.broadcast %0 : i32 to vector<8x128xi32>
    %61 = arith.xori %59, %60 : vector<8x128xi32>
    %c-1209970334_i32 = arith.constant -1209970334 : i32
    %62 = vector.broadcast %c-1209970334_i32 : i32 to vector<8x128xi32>
    %63 = arith.xori %61, %62 : vector<8x128xi32>
    %c16_i32_17 = arith.constant 16 : i32
    %64 = vector.broadcast %c16_i32_17 : i32 to vector<8x128xi32>
    %65 = arith.shrui %63, %64 : vector<8x128xi32>
    %66 = arith.xori %63, %65 : vector<8x128xi32>
    %c2146121005_i32_18 = arith.constant 2146121005 : i32
    %67 = vector.broadcast %c2146121005_i32_18 : i32 to vector<8x128xi32>
    %68 = arith.muli %66, %67 : vector<8x128xi32>
    %c15_i32_19 = arith.constant 15 : i32
    %69 = vector.broadcast %c15_i32_19 : i32 to vector<8x128xi32>
    %70 = arith.shrui %68, %69 : vector<8x128xi32>
    %71 = arith.xori %68, %70 : vector<8x128xi32>
    %c-2073254261_i32_20 = arith.constant -2073254261 : i32
    %72 = vector.broadcast %c-2073254261_i32_20 : i32 to vector<8x128xi32>
    %73 = arith.muli %71, %72 : vector<8x128xi32>
    %c16_i32_21 = arith.constant 16 : i32
    %74 = vector.broadcast %c16_i32_21 : i32 to vector<8x128xi32>
    %75 = arith.shrui %73, %74 : vector<8x128xi32>
    %76 = arith.xori %73, %75 : vector<8x128xi32>
    %c31_i32_22 = arith.constant 31 : i32
    %77 = vector.broadcast %c31_i32_22 : i32 to vector<8x128xi32>
    %78 = arith.shrui %76, %77 : vector<8x128xi32>
    %c1_i32_23 = arith.constant 1 : i32
    %79 = vector.broadcast %c1_i32_23 : i32 to vector<8x128xi32>
    %80 = arith.cmpi eq, %78, %79 : vector<8x128xi32>
    %cst_24 = arith.constant 0.000000e+00 : f32
    %81 = vector.broadcast %cst_24 : f32 to vector<8x128xf32>
    %82 = arith.cmpf ogt, %50, %81 : vector<8x128xf32>
    %83 = arith.andi %80, %82 : vector<8x128xi1>
    %cst_25 = arith.constant 2.000000e+00 : f32
    %84 = vector.broadcast %cst_25 : f32 to vector<8x128xf32>
    %85 = arith.mulf %50, %84 : vector<8x128xf32>
    %cst_26 = arith.constant 0.000000e+00 : f32
    %86 = vector.broadcast %cst_26 : f32 to vector<8x128xf32>
    %87 = arith.select %83, %85, %86 : vector<8x128xi1>, vector<8x128xf32>
    %88 = arith.truncf %87 : vector<8x128xf32> to vector<8x128xbf16>
    %c0_27 = arith.constant 0 : index
    %c0_28 = arith.constant 0 : index
    %89 = vector.load %arg7[%c0_27, %c0_28] : memref<128x128xbf16, #tpu.memory_space<vmem>>, vector<128x128xbf16>
    %cst_29 = arith.constant dense<0.000000e+00> : vector<8x128xf32>
    %90 = tpu.matmul %88, %89, %cst_29 {dimension_numbers = #tpu.dot_dimension_numbers<[1], [0], [0], [1], [0, 0, 1, 1], [], []>} : vector<8x128xbf16>, vector<128x128xbf16>, vector<8x128xf32> -> vector<8x128xf32>
    %c0_30 = arith.constant 0 : index
    %c0_31 = arith.constant 0 : index
    %91 = vector.load %arg8[%c0_30, %c0_31] : memref<1x128xf32, #tpu.memory_space<vmem>>, vector<1x128xf32>
    %92 = vector.broadcast %91 : vector<1x128xf32> to vector<8x128xf32>
    %93 = arith.addf %90, %92 : vector<8x128xf32>
    %94 = arith.negf %93 : vector<8x128xf32>
    %95 = math.exp %94 : vector<8x128xf32>
    %cst_32 = arith.constant 1.000000e+00 : f32
    %96 = vector.broadcast %cst_32 : f32 to vector<8x128xf32>
    %97 = arith.addf %96, %95 : vector<8x128xf32>
    %98 = arith.divf %96, %97 : vector<8x128xf32>
    %c0_33 = arith.constant 0 : index
    %c0_34 = arith.constant 0 : index
    %99 = vector.load %arg9[%c0_33, %c0_34] : memref<8x128xf32, #tpu.memory_space<vmem>>, vector<8x128xf32>
    tpu.vector_store %arg9[%c0_33, %c0_34], %98 {strides = array<i32>} : memref<8x128xf32, #tpu.memory_space<vmem>>, vector<8x128xf32>,
    return
  }
  func.func @transform_0(%arg0: i32, %arg1: memref<1xi32, #tpu.memory_space<smem>>) -> (i32, i32) {
    %c0_i32 = arith.constant 0 : i32
    %c0_i32_0 = arith.constant 0 : i32
    return %arg0, %c0_i32 : i32, i32
  }
  func.func @transform_1(%arg0: i32, %arg1: memref<1xi32, #tpu.memory_space<smem>>) -> (i32, i32) {
    %c0_i32 = arith.constant 0 : i32
    %c0_i32_0 = arith.constant 0 : i32
    %c0_i32_1 = arith.constant 0 : i32
    return %c0_i32, %c0_i32_0 : i32, i32
  }
  func.func @transform_2(%arg0: i32, %arg1: memref<1xi32, #tpu.memory_space<smem>>) -> (i32, i32) {
    %c0_i32 = arith.constant 0 : i32
    %c0_i32_0 = arith.constant 0 : i32
    %c0_i32_1 = arith.constant 0 : i32
    return %c0_i32, %c0_i32_0 : i32, i32
  }
  func.func @transform_3(%arg0: i32, %arg1: memref<1xi32, #tpu.memory_space<smem>>) -> (i32, i32) {
    %c0_i32 = arith.constant 0 : i32
    %c0_i32_0 = arith.constant 0 : i32
    %c0_i32_1 = arith.constant 0 : i32
    return %c0_i32, %c0_i32_0 : i32, i32
  }
  func.func @transform_4(%arg0: i32, %arg1: memref<1xi32, #tpu.memory_space<smem>>) -> (i32, i32) {
    %c0_i32 = arith.constant 0 : i32
    %c0_i32_0 = arith.constant 0 : i32
    %c0_i32_1 = arith.constant 0 : i32
    return %c0_i32, %c0_i32_0 : i32, i32
  }
  func.func @transform_5(%arg0: i32, %arg1: memref<1xi32, #tpu.memory_space<smem>>) -> (i32, i32) {
    %c0_i32 = arith.constant 0 : i32
    %c0_i32_0 = arith.constant 0 : i32
    %c0_i32_1 = arith.constant 0 : i32
    return %c0_i32, %c0_i32_0 : i32, i32
  }
  func.func @transform_6(%arg0: i32, %arg1: memref<1xi32, #tpu.memory_space<smem>>) -> (i32, i32) {
    %c0_i32 = arith.constant 0 : i32
    %c0_i32_0 = arith.constant 0 : i32
    %c0_i32_1 = arith.constant 0 : i32
    return %c0_i32, %c0_i32_0 : i32, i32
  }
  func.func @transform_7(%arg0: i32, %arg1: memref<1xi32, #tpu.memory_space<smem>>) -> (i32, i32) {
    %c0_i32 = arith.constant 0 : i32
    %c0_i32_0 = arith.constant 0 : i32
    return %arg0, %c0_i32 : i32, i32
  }
}

</mosaic_0001>

<bundles_post_ra>
// kernel: mlp_classifier_forward.1
= control target key start
LH: loop header
LB: loop body
LE: loop exit
PB: predicated region body
PF: predicated region fallthrough
CT: control target
= control target key end

     0   :  { %v112_v15 = vlaneseq  ;;  %s610_s2 = inlined_call_operand.vmem [shape: bf16[128,128], index: 2, kind: input, shape index: {}]   ;;  %s611_s4 = inlined_call_operand.vmem [shape: bf16[128,128], index: 4, kind: input, shape index: {}]   ;;  %s612_s3 = inlined_call_operand.vmem [shape: f32[1,128], index: 3, kind: input, shape index: {}]   ;;  %s613_s1 = inlined_call_operand.vmem [shape: bf16[8,128], index: 1, kind: input, shape index: {}]   ;;  %s614_s5 = inlined_call_operand.vmem [shape: f32[1,128], index: 5, kind: input, shape index: {}]   ;;  %s615_s0 = inlined_call_operand.<no memory space> [shape: s32[1], index: 0, kind: input, shape index: {}]   ;;  %s616_s6 = inlined_call_operand.vmem [shape: bf16[128,128], index: 6, kind: input, shape index: {}]   ;;  %s617_s7 = inlined_call_operand.vmem [shape: f32[1,128], index: 7, kind: input, shape index: {}]   ;;  %s618_s8 = inlined_call_operand.vmem [shape: f32[8,128], index: 8, kind: output, shape index: {}]  }
   0x1   :  { %v451_v0 = vld [vmem:[%s610_s2 + $0x38] sm:$0xff]  ;;  %v450_v1 = vld [vmem:[%s610_s2 + $0x30] sm:$0xff]  ;;  %v449_v4 = vld [vmem:[%s610_s2 + $0x28] sm:$0xff]  ;;  %v121_v21 = vstv %s615_s0 }
   0x2   :  { %99 = vmatpush.bf16.msra.mxu0 %v451_v0  ;;  %v459_v2 = vld [vmem:[%s611_s4 + $0x38] sm:$0xff]  ;;  %v458_v3 = vld [vmem:[%s611_s4 + $0x30] sm:$0xff]  ;;  %v457_v5 = vld [vmem:[%s611_s4 + $0x28] sm:$0xff]  ;;  %v113_v16 = vshrl.u32 %v112_v15, 7  ;;  %v117_v17 = vand.u32 127, %v112_v15 }
   0x3   :  { %207 = vmatpush.bf16.msra.mxu1 %v459_v2  ;;  %v448_v6 = vld [vmem:[%s610_s2 + $0x20] sm:$0xff]  ;;  %v447_v8 = vld [vmem:[%s610_s2 + $0x18] sm:$0xff]  ;;  %v446_v10 = vld [vmem:[%s610_s2 + $0x10] sm:$0xff] }
   0x4   :  { %v456_v7 = vld [vmem:[%s611_s4 + $0x20] sm:$0xff]  ;;  %v455_v9 = vld [vmem:[%s611_s4 + $0x18] sm:$0xff]  ;;  %v454_v11 = vld [vmem:[%s611_s4 + $0x10] sm:$0xff]  ;;  %v118_v18 = vmul.u32 2654435769, %v113_v16 }
   0x5   :  { %v445_v12 = vld [vmem:[%s610_s2 + $0x8] sm:$0xff]  ;;  %v444_v13 = vld [vmem:[%s610_s2] sm:$0xff]  ;;  %v119_v19 = vmul.u32 2246822507, %v117_v17  ;;  %v467_v29 = vld [vmem:[%s616_s6 + $0x38] sm:$0xff] }
   0x6   :  { %100 = vmatpush.bf16.msra.mxu0 %v450_v1  ;;  %v30_v14 = vld [vmem:[%s613_s1] sm:$0xf]  ;;  %v453_v25 = vld [vmem:[%s611_s4 + $0x8] sm:$0xff]  ;;  %304 = vmatpush.bf16.msra.mxu2 %v467_v29  ;;  %v466_v31 = vld [vmem:[%s616_s6 + $0x30] sm:$0xff] }
   0x7   :  { %208 = vmatpush.bf16.msra.mxu1 %v458_v3  ;;  %v120_v20 = vadd.s32 %v119_v19, %v118_v18  ;;  %v452_v27 = vld [vmem:[%s611_s4] sm:$0xff]  ;;  %v465_v33 = vld [vmem:[%s616_s6 + $0x28] sm:$0xff]  ;;  %v463_v37 = vld [vmem:[%s616_s6 + $0x18] sm:$0xff] }
   0x8   :  { %v464_v35 = vld [vmem:[%s616_s6 + $0x20] sm:$0xff]  ;;  %v462_v39 = vld [vmem:[%s616_s6 + $0x10] sm:$0xff]  ;;  %v461_v49 = vld [vmem:[%s616_s6 + $0x8] sm:$0xff] }
   0x9   :  { %v122_v22 = vxor.u32 %v121_v21, %v120_v20  ;;  %v468_v40 = vld [vmem:[%s612_s3] ss:$0 sm:$0xff] }
   0xa   :  { %101 = vmatpush.bf16.msra.mxu0 %v449_v4  ;;  %305 = vmatpush.bf16.msra.mxu2 %v466_v31  ;;  %v460_v51 = vld [vmem:[%s616_s6] sm:$0xff] }
   0xb   :  { %209 = vmatpush.bf16.msra.mxu1 %v457_v5  ;;  %v123_v23 = vxor.u32 608135816, %v122_v22  ;;  %v220_v47 = vxor.u32 3084996962, %v122_v22  ;;  %v469_v58 = vld [vmem:[%s614_s5] ss:$0 sm:$0xff] }
   0xc   :  { %v470_v1 = vld [vmem:[%s617_s7] ss:$0 sm:$0xff] }
   0xd   :  { %v124_v24 = vshrl.u32 %v123_v23, 16  ;;  %v221_v48 = vshrl.u32 %v220_v47, 16 }
   0xe   :  { %102 = vmatpush.bf16.msra.mxu0 %v448_v6  ;;  %306 = vmatpush.bf16.msra.mxu2 %v465_v33 }
   0xf   :  { %210 = vmatpush.bf16.msra.mxu1 %v456_v7  ;;  %v125_v26 = vxor.u32 %v124_v24, %v123_v23  ;;  %v222_v50 = vxor.u32 %v221_v48, %v220_v47 }
  0x11   :  { %v126_v28 = vmul.u32 2146121005, %v125_v26  ;;  %v223_v52 = vmul.u32 2146121005, %v222_v50 }
  0x12   :  { %103 = vmatpush.bf16.msra.mxu0 %v447_v8  ;;  %307 = vmatpush.bf16.msra.mxu2 %v464_v35 }
  0x13   :  { %211 = vmatpush.bf16.msra.mxu1 %v455_v9  ;;  %v127_v30 = vshrl.u32 %v126_v28, 15  ;;  %v224_v53 = vshrl.u32 %v223_v52, 15 }
  0x15   :  { %v128_v32 = vxor.u32 %v127_v30, %v126_v28  ;;  %v225_v54 = vxor.u32 %v224_v53, %v223_v52 }
  0x16   :  { %104 = vmatpush.bf16.msra.mxu0 %v446_v10  ;;  %308 = vmatpush.bf16.msra.mxu2 %v463_v37 }
  0x17   :  { %212 = vmatpush.bf16.msra.mxu1 %v454_v11  ;;  %v129_v34 = vmul.u32 2221713035, %v128_v32  ;;  %v226_v55 = vmul.u32 2221713035, %v225_v54 }
  0x19   :  { %v130_v36 = vshrl.u32 %v129_v34, 16  ;;  %v227_v56 = vshrl.u32 %v226_v55, 16 }
  0x1a   :  { %105 = vmatpush.bf16.msra.mxu0 %v445_v12  ;;  %309 = vmatpush.bf16.msra.mxu2 %v462_v39 }
  0x1b   :  { %213 = vmatpush.bf16.msra.mxu1 %v453_v25  ;;  %v131_v38 = vxor.u32 %v130_v36, %v129_v34  ;;  %v228_v57 = vxor.u32 %v227_v56, %v226_v55 }
  0x1d   :  { %v132_v41 = vshrl.u32 %v131_v38, 31  ;;  %v229_v59 = vshrl.u32 %v228_v57, 31 }
  0x1e   :  { %106 = vmatpush.bf16.msra.mxu0 %v444_v13  ;;  %310 = vmatpush.bf16.msra.mxu2 %v461_v49 }
  0x1f   :  { %214 = vmatpush.bf16.msra.mxu1 %v452_v27  ;;  %vm133_vm0 = vcmp.eq.s32.totalorder %v132_v41, 1  ;;  %vm230_vm4 = vcmp.eq.s32.totalorder %v229_v59, 1 }
  0x21   :  { %107 = vmatmul.bf16.vlgmr.msra.gmra.mxu0 %v30_v14 }
  0x22   :  { %311 = vmatpush.bf16.msra.mxu2 %v460_v51 }
  0x9e   :  { %v108_v42 = vpop.f32.mrf.mxu0 }
  0x9f   :  { %v109_v43 = vadd.f32 %v468_v40, %v108_v42 }
  0xa1   :  { %vm134_vm1 = vcmp.gt.f32.partialorder %v109_v43, 0.0  ;;  %v136_v44 = vmul.f32 2.0, %v109_v43 }
  0xa2   :  { %vm135_vm2 = vmand %vm133_vm0, %vm134_vm1 }
  0xa3   :  { %v406_v45 = vpack.c.bf16 %v136_v44, %v136_v44  ;;  %vm405_vm3 = vmpackc.low %vm135_vm2, %vm135_vm2 }
  0xa5   :  { %407 = vmatmul.msk.bf16.vlgmr.msra.gmra.mxu1 %vm405_vm3, %v406_v45 }
  0xa6   :  { %v110_v46 = vpop.f32.mrf.mxu0 }
 0x122   :  { %v216_v60 = vpop.f32.mrf.mxu1 }
 0x123   :  { %v217_v61 = vadd.f32 %v469_v58, %v216_v60 }
 0x125   :  { %vm231_vm5 = vcmp.gt.f32.partialorder %v217_v61, 0.0  ;;  %v233_v62 = vmul.f32 2.0, %v217_v61 }
 0x126   :  { %vm232_vm6 = vmand %vm230_vm4, %vm231_vm5 }
 0x127   :  { %v441_v63 = vpack.c.bf16 %v233_v62, %v233_v62  ;;  %vm440_vm7 = vmpackc.low %vm232_vm6, %vm232_vm6 }
 0x129   :  { %442 = vmatmul.msk.bf16.vlgmr.msra.gmra.mxu2 %vm440_vm7, %v441_v63 }
 0x12a   :  { %v218_v0 = vpop.f32.mrf.mxu1 }
 0x1ac   :  { %v313_v2 = vpop.f32.mrf.mxu2 }
 0x1ad   :  { %v314_v3 = vadd.f32 %v470_v1, %v313_v2 }
 0x1af   :  { %v443_v4 = vmul.f32 -1.442695, %v314_v3 }
 0x1b1   :  { %471 = vpow2.f32 %v443_v4 }
 0x1b4   :  { %v315_v5 = vpop.f32.mrf.mxu2 }
 0x1b7   :  { %v472_v6 = vpop.eup %471 }
 0x1b8   :  { %v320_v7 = vadd.f32 1.0, %v472_v6 }
 0x1ba   :  { %473 = vrcp.f32 %v320_v7  ;;  %v332_v11 = vand.u32 2147483648, %v320_v7  ;;  %v330_v13 = vand.u32 2147483647, %v320_v7  ;;  %vm326_vm9 = vweird.f32 %v320_v7 }
 0x1bc   :  { %v333_v15 = vor.u32 1.1754944e-38, %v332_v11  ;;  %vm331_vm11 = vcmp.eq.f32.partialorder %v330_v13, 8.507059e+37 }
 0x1c0   :  { %v474_v8 = vpop.eup %473 }
 0x1c1   :  { %v322_v9 = vmul.f32 %v474_v8, %v320_v7  ;;  %vm327_vm8 = vweird.f32 %v474_v8 }
 0x1c2   :  { %vm328_vm10 = vmor %vm326_vm9, %vm327_vm8 }
 0x1c3   :  { %v323_v10 = vsub.f32 1.0, %v322_v9 }
 0x1c5   :  { %v324_v12 = vmul.f32 %v474_v8, %v323_v10 }
 0x1c7   :  { %v325_v14 = vadd.f32 %v474_v8, %v324_v12 }
 0x1c9   :  { %v329_v16 = vsel %vm328_vm10, %v474_v8, %v325_v14 }
 0x1ca   :  { %v334_v17 = vsel %vm331_vm11, %v333_v15, %v329_v16 }
 0x1cb   :  { %336 = vst [vmem:[%s618_s8] sm:$0xff] %v334_v17 }

</bundles_post_ra>
